<compile_context>
chip_gen: v7x
topology: tpu7x:2x2x1
jax: 0.10.0
libtpu: 0.0.40
codegen_flags: <defaults>
</compile_context>

<pallas_src>
import jax
import jax.numpy as jnp
from jax.experimental import pallas as pl
from jax.experimental.pallas import tpu as pltpu

_MiB = 1024 * 1024
_MIN_MULTISTEP_BYTES = 512 * 1024   # below this, a single full block is cheapest
_MIN_STEPS = 4                      # enough steps to pipeline / feed 2 v7x TCs


def _relu_kernel(x_ref, o_ref):
    # One vmax per vreg on the VPU; the kernel is purely HBM-streaming bound.
    o_ref[...] = jnp.maximum(x_ref[...], 0)


def _round_up(x: int, m: int) -> int:
    return ((x + m - 1) // m) * m


def _vmem_budget():
    """Returns (scoped vmem_limit_bytes or None, per-block byte target)."""
    try:
        info = pltpu.get_tpu_info()
        capacity = getattr(info, "vmem_capacity_bytes", None)
    except Exception:  # no TPU info available (e.g. emulator); stay safe.
        capacity = None
    if capacity is None:
        # Unknown generation: stay inside every chip's *default* scoped VMEM
        # (16 MiB on v5e) -> 2 MiB blocks, no explicit limit override.
        return None, 2 * _MiB
    if capacity >= 96 * _MiB:
        # v5e / v6e: 128 MiB physical VMEM.  Raise the scoped limit and use
        # large blocks: 12 MiB x 4 (double-buffered in + out) = 48 MiB < 64 MiB.
        return 64 * _MiB, 12 * _MiB
    # v7x: 64 MiB physical per TensorCore.  8 MiB x 4 = 32 MiB with headroom.
    return 40 * _MiB, 8 * _MiB


def _relu_pallas_2d(x2d: jax.Array, *, donate: bool = False) -> jax.Array:
    """Tiled elementwise ReLU on a (rows, lanes) slab, lanes % 128 == 0."""
    rows, lanes = x2d.shape
    itemsize = x2d.dtype.itemsize
    nbytes = rows * lanes * itemsize
    # Minimum sublane multiple by dtype packing: f32 -> 8, bf16 -> 16, i8 -> 32.
    sublane = 8 * max(1, 4 // itemsize)

    vmem_limit, block_bytes = _vmem_budget()
    max_block_rows = max(
        sublane, ((block_bytes // (lanes * itemsize)) // sublane) * sublane
    )

    if nbytes < _MIN_MULTISTEP_BYTES or rows <= _MIN_STEPS * sublane:
        # Small slab: one full-extent block (always layout-legal).
        block_rows = rows
    else:
        # Shape the grid: big enough blocks to amortize the ~0.35 us/step
        # overhead, but at least _MIN_STEPS (even) steps so DMA and compute
        # pipeline and both v7x TensorCores stay busy.
        steps = max(_MIN_STEPS, pl.cdiv(rows, max_block_rows))
        if steps % 2:
            steps += 1
        base = min(max_block_rows, _round_up(pl.cdiv(rows, steps), sublane))
        block_rows = base
        # Prefer a nearby block size that divides rows exactly: avoids a tiny
        # ragged tail block (masked partial DMA, idle core on the last step).
        for cand in range(base, min(max_block_rows, base + 4 * sublane) + 1, sublane):
            if rows % cand == 0:
                block_rows = cand
                break

    grid = (pl.cdiv(rows, block_rows),)

    extra_kwargs = {}
    if donate:
        # Only valid when the caller donates x (jax.jit(..., donate_argnums));
        # otherwise XLA inserts a defensive full copy that is *slower* than
        # simply allocating a fresh output buffer.
        extra_kwargs["input_output_aliases"] = {0: 0}

    return pl.pallas_call(
        _relu_kernel,
        out_shape=jax.ShapeDtypeStruct((rows, lanes), x2d.dtype),
        grid_spec=pltpu.PrefetchScalarGridSpec(
            num_scalar_prefetch=0,
            grid=grid,
            in_specs=[pl.BlockSpec((block_rows, lanes), lambda i: (i, 0))],
            out_specs=pl.BlockSpec((block_rows, lanes), lambda i: (i, 0)),
        ),
        compiler_params=pltpu.CompilerParams(
            # No-op on single-TC v5e/v6e; shards grid steps across both v7x
            # TensorCores when the grid has >= 2 steps.
            dimension_semantics=("parallel",),
            vmem_limit_bytes=vmem_limit,
        ),
        cost_estimate=pl.CostEstimate(
            flops=rows * lanes,
            transcendentals=0,
            bytes_accessed=2 * rows * lanes * itemsize,
        ),
        **extra_kwargs,
    )(x2d)


def naive_augmented_relu_forward(
    x: jax.Array,
    p: float = 0.5,
    *,
    donate: bool = False,
    min_pallas_bytes: int = 1024 * 1024,
) -> jax.Array:
    """Forward pass of NaiveAugmentedReLULayer (== ReLU).

    `p` only perturbs the custom autograd *backward* in the PyTorch module; it
    is accepted for API parity but has no forward effect.

    Set `donate=True` only when calling under jax.jit with x donated; the
    output then aliases the input buffer (true in-place ReLU).
    """
    del p  # TODO(synk): p only alters the stochastic backward pass; no forward effect.

    n = x.size
    nbytes = n * x.dtype.itemsize

    # Pick a lane-dense flattening (wide last dim, multiple of 128) that
    # divides the element count exactly -> pure view reshape, no pad / slice.
    lanes = None
    for cand in (512, 128):
        if n % cand == 0:
            lanes = cand
            break

    if lanes is None or nbytes < min_pallas_bytes:
        # Small / lane-irregular tensors, or a ReLU sitting next to its
        # producer/consumer in a larger jitted graph: a fused XLA maximum is
        # optimal for a memory-bound elementwise op (zero extra HBM traffic).
        return jnp.maximum(x, 0)

    rows = n // lanes
    x2d = x.reshape(rows, lanes)          # view-only, no copy
    return _relu_pallas_2d(x2d, donate=donate).reshape(x.shape)


if __name__ == "__main__":
    key = jax.random.PRNGKey(0)
    p = 0.5  # module hyper-parameter; forward-pass no-op

    # Small NCHW activation consistent with the PyTorch module.
    x = jax.random.normal(key, (2, 4, 16, 16), dtype=jnp.float32)
    # Force the Pallas path even at this small size so the kernel is exercised
    # (single full-extent block, grid of one step).
    y = naive_augmented_relu_forward(x, p, min_pallas_bytes=0)
    jax.block_until_ready(y)
    assert y.shape == x.shape and y.dtype == x.dtype
    assert bool(jnp.allclose(y, jnp.maximum(x, 0.0))), "mismatch vs reference ReLU"

    # A 512 KiB slab exercises the multi-step (>= 4, even) pipelined grid.
    x2 = jax.random.normal(jax.random.PRNGKey(0), (4, 8, 64, 64), dtype=jnp.float32)
    y2 = naive_augmented_relu_forward(x2, p, min_pallas_bytes=0)
    jax.block_until_ready(y2)
    assert bool(jnp.allclose(y2, jnp.maximum(x2, 0.0))), "mismatch (multi-step grid)"

    # Lane-irregular shape exercises the fused-XLA fallback.
    x3 = jax.random.normal(jax.random.PRNGKey(0), (2, 3, 5, 7), dtype=jnp.float32)
    y3 = naive_augmented_relu_forward(x3, p)
    jax.block_until_ready(y3)
    assert bool(jnp.allclose(y3, jnp.maximum(x3, 0.0))), "mismatch (fallback path)"

    print("KERNEL_OK")
</pallas_src>

<mosaic_0001>
module attributes {stable_mosaic.version = 11 : i64} {
  func.func @_relu_kernel(%arg0: i32, %arg1: memref<4x512xf32, #tpu.memory_space<vmem>>, %arg2: memref<4x512xf32, #tpu.memory_space<vmem>>) attributes {dimension_semantics = [#tpu.dimension_semantics<parallel>], iteration_bounds = array<i64: 1>, scalar_prefetch = 0 : i64, scratch_operands = 0 : i64, tpu.core_type = #tpu.core_type<tc>, window_params = [{transform_indices = @transform_0, window_bounds = array<i64: 4, 512>}, {transform_indices = @transform_1, window_bounds = array<i64: 4, 512>}]} {
    %c0 = arith.constant 0 : index
    %c0_0 = arith.constant 0 : index
    %0 = vector.load %arg1[%c0, %c0_0] : memref<4x512xf32, #tpu.memory_space<vmem>>, vector<4x512xf32>
    %cst = arith.constant 0.000000e+00 : f32
    %1 = vector.broadcast %cst : f32 to vector<4x512xf32>
    %2 = arith.maximumf %0, %1 : vector<4x512xf32>
    %c0_1 = arith.constant 0 : index
    %c0_2 = arith.constant 0 : index
    %3 = vector.load %arg2[%c0_1, %c0_2] : memref<4x512xf32, #tpu.memory_space<vmem>>, vector<4x512xf32>
    tpu.vector_store %arg2[%c0_1, %c0_2], %2 {strides = array<i32>} : memref<4x512xf32, #tpu.memory_space<vmem>>, vector<4x512xf32>,
    return
  }
  func.func @transform_0(%arg0: i32) -> (i32, i32) {
    %c0_i32 = arith.constant 0 : i32
    %c0_i32_0 = arith.constant 0 : i32
    return %arg0, %c0_i32 : i32, i32
  }
  func.func @transform_1(%arg0: i32) -> (i32, i32) {
    %c0_i32 = arith.constant 0 : i32
    %c0_i32_0 = arith.constant 0 : i32
    return %arg0, %c0_i32 : i32, i32
  }
}

</mosaic_0001>

<bundles_post_ra>
// kernel: tpu_custom_call.1
= control target key start
LH: loop header
LB: loop body
LE: loop exit
PB: predicated region body
PF: predicated region fallthrough
CT: control target
= control target key end

     0   :  { %6 = vsyncpa [#allocation3], 0  ;;  %s128_s0 = inlined_call_operand.hbm [shape: f32[4,512], index: 0, kind: input, shape index: {}]   ;;  %s129_s1 = inlined_call_operand.hbm [shape: f32[4,512], index: 1, kind: output, shape index: {}]  }
   0x1   :  { %7 = vsyncpa [#allocation4], 0  ;;  %s92_s6 = smov [#allocation2]   ;;  %s44_s10 = scalar_lea.hbm %s128_s0, 256 }
   0x2   :  { %s14_s7 = sshll.u32 %s92_s6, 4  ;;  %p45_p0 = scmp.ne.s32.totalorder %s128_s0, %s44_s10  ;;  %s15_s7 = int_to_ptr.vmem [resolvable:$true] %s14_s7 }
   0x3   :  { %p48_p1 = scmp.lt.u32.totalorder %s44_s10, %s128_s0 }
   0x5   :  { %p50_p2 = pnand %p48_p1, %p45_p0 }
   0x7   :  { %53 = shalt.err (!%p50_p2)
}
   0x8   :  { %s54_s15 = scalar_lea.vmem %s15_s7, 256  ;;  %p59_p4 = scmp.lt.s32.totalorder %s15_s7, %s15_s7 }
   0x9   :  { %p55_p3 = scmp.ne.s32.totalorder %s15_s7, %s54_s15  ;;  %p60_p5 = scmp.lt.s32.totalorder %s54_s15, %s54_s15 }
   0xb   :  { %p61_p6 = por %p60_p5, %p59_p4 }
   0xd   :  { %p62_p7 = pnand %p61_p6, %p55_p3 }
   0xf   :  { %65 = shalt.err (!%p62_p7)
}
  0x10   :  { %17 = dma.hbm_to_vmem [thread:$0]  %s128_s0, 256, %s15_s7, [#allocation3]  }
  0x11   :  { %88 = dma.done.wait [#allocation3], 256  }
  0x12   :  { %89 = vsyncadd [#allocation3], 4294967040  ;;  %s93_s18 = smov [#allocation5]   ;;  %v21_v0 = vld [vmem:[#allocation2] sm:$0xff]  ;;  %v22_v1 = vld [vmem:[#allocation2 + $0x8] sm:$0xff] }
  0x13   :  { %s33_s19 = sshll.u32 %s93_s18, 4  ;;  %v23_v2 = vmax.f32 %v21_v0, 0.0  ;;  %v24_v3 = vmax.f32 %v22_v1, 0.0  ;;  %s34_s19 = int_to_ptr.vmem [resolvable:$true] %s33_s19 }
  0x14   :  { %s66_s20 = scalar_lea.vmem %s34_s19, 256  ;;  %p71_p9 = scmp.lt.s32.totalorder %s34_s19, %s34_s19 }
  0x15   :  { %25 = vst [vmem:[#allocation5] sm:$0xff] %v23_v2  ;;  %26 = vst [vmem:[#allocation5 + $0x8] sm:$0xff] %v24_v3  ;;  %p67_p8 = scmp.ne.s32.totalorder %s34_s19, %s66_s20  ;;  %p72_p10 = scmp.lt.s32.totalorder %s66_s20, %s66_s20 }
  0x17   :  { %p73_p11 = por %p72_p10, %p71_p9 }
  0x19   :  { %p74_p12 = pnand %p73_p11, %p67_p8 }
  0x1b   :  { %77 = shalt.err (!%p74_p12)
}
  0x1c   :  { %s78_s22 = scalar_lea.hbm %s129_s1, 256 }
  0x1d   :  { %p79_p13 = scmp.ne.s32.totalorder %s129_s1, %s78_s22  ;;  %p82_p0 = scmp.lt.u32.totalorder %s78_s22, %s129_s1 }
  0x1f   :  { %p84_p1 = pnand %p82_p0, %p79_p13 }
  0x21   :  { %87 = shalt.err (!%p84_p1)
}
  0x22   :  { %36 = dma.vmem_to_hbm [thread:$0]  %s34_s19, 256, %s129_s1, [#allocation4]  }
  0x23   :  { %90 = dma.done.wait [#allocation4], 256  }
  0x24   :  { %91 = vsyncadd [#allocation4], 4294967040 }
  0x25   :  { %40 = vsyncpa [#allocation3], 1 }
  0x26   :  { %41 = vsyncpa [#allocation4], 1 }

</bundles_post_ra>
